<compile_context>
chip_gen: v7x
topology: tpu7x:2x2x1
jax: 0.10.0
libtpu: 0.0.40
codegen_flags: <defaults>
</compile_context>

<pallas_src>
import functools

import jax
import jax.numpy as jnp
import numpy as np
from jax.experimental import pallas as pl
from jax.experimental.pallas import tpu as pltpu


def _skip_connection_kernel(x_ref, w_ref, b_ref, o_ref):
    # x_ref: (TM, K)  w_ref: (K, N)  b_ref: (1, N)  o_ref: (TM, N), all in VMEM.
    # Single fused MXU matmul (f32 accumulate) + bias add; N is a multiple of
    # 128 on the packed path so stores are lane-dense.
    acc = jnp.dot(x_ref[...], w_ref[...], preferred_element_type=jnp.float32)
    o_ref[...] = (acc + b_ref[...]).astype(o_ref.dtype)


def _round_up(a, b):
    return ((a + b - 1) // b) * b


def _cdiv(a, b):
    return (a + b - 1) // b


def _default_lane_target():
    # 256-wide packing matches the 2x256x256 MXU and the ample compute slack on
    # v6e/v7x; keep 128 on v5e/older (4x128x128 MXU, less f32 headroom).
    try:
        kind = jax.devices()[0].device_kind.lower()
    except Exception:
        return 128
    if "v6" in kind or "v7" in kind:
        return 256
    return 128


@functools.partial(jax.jit, static_argnames=("tm", "lane_target"))
def _skip_connection_impl(x, w_inner, b_inner, w_skip, scale, *, tm, lane_target):
    B, S, D_IN = x.shape
    D_OUT = w_inner.shape[1]
    D_SKIP = w_skip.shape[1]
    assert D_SKIP >= D_OUT, "skip_dim_change must produce at least D_OUT features"

    # ---- fold scale + skip slice into a single weight / bias (parameter-side) ----
    w_comb = scale[0] * w_inner + w_skip[:, :D_OUT]            # (D_IN, D_OUT)
    b_comb = scale[0] * b_inner                                 # (D_OUT,)

    # ---- lane-density packing: pack rows so N (and K) become lane-dense -------
    pack = lane_target // D_OUT if (D_OUT < lane_target and lane_target % D_OUT == 0) else 1
    if pack > 1:
        w_k = jnp.kron(jnp.eye(pack, dtype=w_comb.dtype), w_comb)   # block-diag (K, N)
        b_k = jnp.tile(b_comb, pack)
    else:
        w_k, b_k = w_comb, b_comb
    K = pack * D_IN
    N = pack * D_OUT
    b_k = b_k.reshape(1, N)

    # ---- row handling: no full pad / slice in the common (divisible) case ------
    M = B * S
    x2 = x.reshape(M, D_IN)
    rem = M % pack
    if rem:                                    # uncommon: <= pack-1 extra rows
        x2 = jnp.pad(x2, ((0, pack - rem), (0, 0)))
    M_pad = M + (pack - rem if rem else 0)
    mp = M_pad // pack
    x_p = x2.reshape(mp, K)                    # contiguous row-major reshape (free)

    # Row tile: large blocks amortise per-step overhead, capped so the grid has
    # >= 2 steps when possible (both v7x TensorCores busy); tiny inputs use a
    # single full-extent block.
    if mp <= 8:
        tm_eff = mp
    else:
        tm_eff = max(8, min(tm, _round_up(_cdiv(mp, 2), 8)))
    grid = _cdiv(mp, tm_eff)

    itemsize = jnp.dtype(x.dtype).itemsize
    w_itemsize = jnp.dtype(w_k.dtype).itemsize
    vmem_needed = 2 * tm_eff * (K + N) * itemsize + (K * N + N) * w_itemsize
    vmem_limit = int(min(max(int(1.5 * vmem_needed) + (1 << 20), 8 << 20), 32 << 20))

    cost = pl.CostEstimate(
        flops=2 * mp * K * N,
        transcendentals=0,
        bytes_accessed=mp * (K + N) * itemsize + (K * N + N) * w_itemsize,
    )

    out_p = pl.pallas_call(
        _skip_connection_kernel,
        out_shape=jax.ShapeDtypeStruct((mp, N), x.dtype),
        grid=(grid,),
        in_specs=[
            pl.BlockSpec((tm_eff, K), lambda i: (i, 0)),   # activation tile (lane-dense)
            pl.BlockSpec((K, N), lambda i: (0, 0)),        # fused block-diag weight (resident)
            pl.BlockSpec((1, N), lambda i: (0, 0)),        # fused bias
        ],
        out_specs=pl.BlockSpec((tm_eff, N), lambda i: (i, 0)),
        compiler_params=pltpu.CompilerParams(
            dimension_semantics=("parallel",),             # row axis shards across TCs (v7x)
            vmem_limit_bytes=vmem_limit,
        ),
        cost_estimate=cost,
    )(x_p, w_k, b_k)

    out = out_p.reshape(M_pad, D_OUT)
    if M_pad != M:                             # only when M % pack != 0
        out = out[:M]
    return out.reshape(B, S, D_OUT)


def skip_connection(x, w_inner, b_inner, w_skip, scale, *, tm=2048, lane_target=None):
    """SkipConnection forward.

    x      : [B, S, D_IN]
    w_inner: [D_IN, D_OUT]   (inner Linear weight, pre-transposed)
    b_inner: [D_OUT]
    w_skip : [D_IN, D_SKIP]  (skip_dim_change weight, pre-transposed), D_SKIP >= D_OUT
    scale  : [1]             (id_init parameter)
    """
    if lane_target is None:
        lane_target = _default_lane_target()
    return _skip_connection_impl(x, w_inner, b_inner, w_skip, scale,
                                 tm=tm, lane_target=lane_target)


def _reference(x, w_inner, b_inner, w_skip, scale):
    out = (x @ w_inner + b_inner) * scale[0]
    skip = x @ w_skip
    return skip[..., : out.shape[-1]] + out


if __name__ == "__main__":
    key = jax.random.PRNGKey(0)
    kx, kwi, kbi, kws, kx2 = jax.random.split(key, 5)

    D_IN, D_OUT, D_SKIP = 32, 32, 48

    # Deterministic parameter init (PyTorch-style uniform ranges, synthetic).
    bound = 1.0 / np.sqrt(D_IN)
    w_inner = jax.random.uniform(kwi, (D_IN, D_OUT), jnp.float32, -bound, bound)
    b_inner = jax.random.uniform(kbi, (D_OUT,), jnp.float32, -bound, bound)
    w_skip = jax.random.uniform(kws, (D_IN, D_SKIP), jnp.float32, -bound, bound)

    # Primary small shape: batch=2, seq=8, hidden=32.
    x_small = jax.random.normal(kx, (2, 8, D_IN), dtype=jnp.float32)
    # Odd-sized shape: exercises multi-step grid, partial edge blocks and the
    # rare pack-remainder pad path.
    x_odd = jax.random.normal(kx2, (3, 347, D_IN), dtype=jnp.float32)

    # id_init=True -> scale initialized to zeros(1); also exercise a non-zero
    # ("trained") scale so the fused inner path is actually checked.
    for x in (x_small, x_odd):
        for scale in (jnp.zeros((1,), jnp.float32),
                      jnp.full((1,), 0.37, jnp.float32)):
            out = jax.block_until_ready(
                skip_connection(x, w_inner, b_inner, w_skip, scale))
            ref = _reference(x, w_inner, b_inner, w_skip, scale)
            np.testing.assert_allclose(np.asarray(out), np.asarray(ref),
                                       rtol=1e-5, atol=1e-4)

    print("KERNEL_OK")
</pallas_src>

<mosaic_0001>
module attributes {stable_mosaic.version = 11 : i64} {
  func.func @_skip_connection_kernel(%arg0: i32, %arg1: memref<4x128xf32, #tpu.memory_space<vmem>>, %arg2: memref<128x128xf32, #tpu.memory_space<vmem>>, %arg3: memref<1x128xf32, #tpu.memory_space<vmem>>, %arg4: memref<4x128xf32, #tpu.memory_space<vmem>>) attributes {dimension_semantics = [#tpu.dimension_semantics<parallel>], iteration_bounds = array<i64: 1>, scalar_prefetch = 0 : i64, scratch_operands = 0 : i64, tpu.core_type = #tpu.core_type<tc>, window_params = [{transform_indices = @transform_0, window_bounds = array<i64: 4, 128>}, {pipeline_mode = #tpu.pipeline_mode<synchronous>, transform_indices = @transform_1, window_bounds = array<i64: 128, 128>}, {pipeline_mode = #tpu.pipeline_mode<synchronous>, transform_indices = @transform_2, window_bounds = array<i64: 1, 128>}, {transform_indices = @transform_3, window_bounds = array<i64: 4, 128>}]} {
    %c0 = arith.constant 0 : index
    %c0_0 = arith.constant 0 : index
    %0 = vector.load %arg1[%c0, %c0_0] : memref<4x128xf32, #tpu.memory_space<vmem>>, vector<4x128xf32>
    %c0_1 = arith.constant 0 : index
    %c0_2 = arith.constant 0 : index
    %1 = vector.load %arg2[%c0_1, %c0_2] : memref<128x128xf32, #tpu.memory_space<vmem>>, vector<128x128xf32>
    %cst = arith.constant dense<0.000000e+00> : vector<4x128xf32>
    %2 = tpu.matmul %0, %1, %cst {dimension_numbers = #tpu.dot_dimension_numbers<[1], [0], [0], [1], [0, 0, 1, 1], [], []>} : vector<4x128xf32>, vector<128x128xf32>, vector<4x128xf32> -> vector<4x128xf32>
    %c0_3 = arith.constant 0 : index
    %c0_4 = arith.constant 0 : index
    %3 = vector.load %arg3[%c0_3, %c0_4] : memref<1x128xf32, #tpu.memory_space<vmem>>, vector<1x128xf32>
    %4 = vector.broadcast %3 : vector<1x128xf32> to vector<4x128xf32>
    %5 = arith.addf %2, %4 : vector<4x128xf32>
    %c0_5 = arith.constant 0 : index
    %c0_6 = arith.constant 0 : index
    %6 = vector.load %arg4[%c0_5, %c0_6] : memref<4x128xf32, #tpu.memory_space<vmem>>, vector<4x128xf32>
    tpu.vector_store %arg4[%c0_5, %c0_6], %5 {strides = array<i32>} : memref<4x128xf32, #tpu.memory_space<vmem>>, vector<4x128xf32>,
    return
  }
  func.func @transform_0(%arg0: i32) -> (i32, i32) {
    %c0_i32 = arith.constant 0 : i32
    %c0_i32_0 = arith.constant 0 : i32
    return %arg0, %c0_i32 : i32, i32
  }
  func.func @transform_1(%arg0: i32) -> (i32, i32) {
    %c0_i32 = arith.constant 0 : i32
    %c0_i32_0 = arith.constant 0 : i32
    %c0_i32_1 = arith.constant 0 : i32
    return %c0_i32, %c0_i32_0 : i32, i32
  }
  func.func @transform_2(%arg0: i32) -> (i32, i32) {
    %c0_i32 = arith.constant 0 : i32
    %c0_i32_0 = arith.constant 0 : i32
    %c0_i32_1 = arith.constant 0 : i32
    return %c0_i32, %c0_i32_0 : i32, i32
  }
  func.func @transform_3(%arg0: i32) -> (i32, i32) {
    %c0_i32 = arith.constant 0 : i32
    %c0_i32_0 = arith.constant 0 : i32
    return %arg0, %c0_i32 : i32, i32
  }
}

</mosaic_0001>

<bundles_post_ra>
// kernel: tile.8
= control target key start
LH: loop header
LB: loop body
LE: loop exit
PB: predicated region body
PF: predicated region fallthrough
CT: control target
= control target key end

     0   :  { %s22_s0 = inlined_call_operand.vmem [shape: f32[32], index: 0, kind: input, shape index: {}]   ;;  %s23_s1 = inlined_call_operand.vmem [shape: f32[4,32], index: 1, kind: output, shape index: {}]  }
   0x1   :  { %v4_v0 = vld [vmem:[%s22_s0] ss:$0 sm:$0xff] }
   0x2   :  { %5 = vst [vmem:[%s23_s1] sm:$0xf] %v4_v0 }

// kernel: tile.9
= control target key start
LH: loop header
LB: loop body
LE: loop exit
PB: predicated region body
PF: predicated region fallthrough
CT: control target
= control target key end

     0   :  { %vm7_vm0 = vcmask 261120   ;;  %s37_s8 = smov 32   ;;  %s38_s9 = smov 64   ;;  %vm13_vm1 = vcmask 1048320   ;;  %vm19_vm2 = vcmask 785920   ;;  %vm25_vm3 = vcmask 523520   ;;  %s55_s0 = inlined_call_operand.vmem [shape: f32[4,32], index: 0, kind: input, shape index: {}]   ;;  %s56_s1 = inlined_call_operand.vmem [shape: f32[1,128], index: 1, kind: output, shape index: {}]  }
   0x1   :  { %v4_v0 = vld [vmem:[%s55_s0] sm:$0xf]  ;;  %s36_s0 = smov 96  }
   0x2   :  { %5 = vst [vmem:[#allocation1] sm:$0xf] %v4_v0 }
   0x9   :  { %v10_v1 = vld [vmem:[#allocation1 + $0x3] sm:$0x1]   ;;  %v22_v2 = vld [vmem:[#allocation1 + $0x1] sm:$0x1]   ;;  %v6_v3 = vld [vmem:[#allocation1] sm:$0x1]  }
   0xa   :  { %11 = vrot.lane.b32.xlu0 %v10_v1, %s36_s0  ;;  %23 = vrot.lane.b32.xlu1 %v22_v2, %s37_s8  ;;  %v16_v4 = vld [vmem:[#allocation1 + $0x2] sm:$0x1]   ;;  %8 = vst.msk [vmem:[#allocation0] sm:$0x1] %vm7_vm0, %v6_v3  }
   0xe   :  { %17 = vrot.lane.b32.xlu0 %v16_v4, %s38_s9 }
  0x7c   :  { %v12_v5 = vpop.permute.xlu0 %11   ;;  %v24_v6 = vpop.permute.xlu1 %23  }
  0x7d   :  { %14 = vst.msk [vmem:[#allocation0] sm:$0x1] %vm13_vm1, %v12_v5  }
  0x80   :  { %v18_v7 = vpop.permute.xlu0 %17  }
  0x81   :  { %20 = vst.msk [vmem:[#allocation0] sm:$0x1] %vm19_vm2, %v18_v7  }
  0x82   :  { %26 = vst.msk [vmem:[#allocation0] sm:$0x1] %vm25_vm3, %v24_v6  }
  0x89   :  { %v30_v8 = vld [vmem:[#allocation0] sm:$0x1] }
  0x8a   :  { %32 = vst [vmem:[%s56_s1] sm:$0x1] %v30_v8 }

// kernel: _skip_connection_impl.1
= control target key start
LH: loop header
LB: loop body
LE: loop exit
PB: predicated region body
PF: predicated region fallthrough
CT: control target
= control target key end

     0   :  { %v193_v0 = vmov 0.0|0.0   ;;  %vm194_vm0 = vmmov 0   ;;  %v195_v4 = vmov 0.0   ;;  %s273_s1 = inlined_call_operand.vmem [shape: f32[128,128], index: 1, kind: input, shape index: {}]   ;;  %s274_s0 = inlined_call_operand.vmem [shape: f32[4,128], index: 0, kind: input, shape index: {}]   ;;  %s275_s2 = inlined_call_operand.vmem [shape: f32[1,128], index: 2, kind: input, shape index: {}]   ;;  %s276_s3 = inlined_call_operand.vmem [shape: f32[4,128], index: 3, kind: output, shape index: {}]  }
   0x1   :  { %166 = vmatprep.subr.bf16.mxu0 %v193_v0  ;;  %v15_v1 = vld [vmem:[%s273_s1] sm:$0xff]  ;;  %v16_v2 = vld [vmem:[%s273_s1 + $0x8] sm:$0xff]  ;;  %v17_v3 = vld [vmem:[%s273_s1 + $0x10] sm:$0xff]  ;;  %163 = vmatprep.mubr.msk.f32.mxu0 %vm194_vm0, %v195_v4 }
   0x2   :  { %v167_v5 = vpack.c.bf16 %v16_v2, %v15_v1  ;;  %v18_v6 = vld [vmem:[%s273_s1 + $0x18] sm:$0xff]  ;;  %v19_v8 = vld [vmem:[%s273_s1 + $0x20] sm:$0xff]  ;;  %v20_v9 = vld [vmem:[%s273_s1 + $0x28] sm:$0xff] }
   0x3   :  { %v170_v7 = vpack.c.bf16 %v18_v6, %v17_v3  ;;  %v173_v10 = vpack.c.bf16 %v20_v9, %v19_v8  ;;  %v21_v11 = vld [vmem:[%s273_s1 + $0x30] sm:$0xff]  ;;  %v22_v12 = vld [vmem:[%s273_s1 + $0x38] sm:$0xff]  ;;  %v23_v14 = vld [vmem:[%s273_s1 + $0x40] sm:$0xff] }
   0x4   :  { %168 = vmatpush3.bf16.msra.mxu0 %v167_v5  ;;  %v176_v13 = vpack.c.bf16 %v22_v12, %v21_v11  ;;  %v24_v15 = vld [vmem:[%s273_s1 + $0x48] sm:$0xff]  ;;  %v25_v17 = vld [vmem:[%s273_s1 + $0x50] sm:$0xff]  ;;  %v26_v18 = vld [vmem:[%s273_s1 + $0x58] sm:$0xff] }
   0x5   :  { %169 = vmatprep.subr.bf16.mxu0 %v193_v0  ;;  %v179_v16 = vpack.c.bf16 %v24_v15, %v23_v14  ;;  %v182_v19 = vpack.c.bf16 %v26_v18, %v25_v17  ;;  %v27_v20 = vld [vmem:[%s273_s1 + $0x60] sm:$0xff]  ;;  %v28_v21 = vld [vmem:[%s273_s1 + $0x68] sm:$0xff]  ;;  %v29_v23 = vld [vmem:[%s273_s1 + $0x70] sm:$0xff] }
   0x6   :  { %v185_v22 = vpack.c.bf16 %v28_v21, %v27_v20  ;;  %v30_v24 = vld [vmem:[%s273_s1 + $0x78] sm:$0xff]  ;;  %v14_v26 = vld [vmem:[%s274_s0] sm:$0xf] }
   0x7   :  { %v188_v25 = vpack.c.bf16 %v30_v24, %v29_v23  ;;  %v113_v27 = vld [vmem:[%s275_s2] ss:$0 sm:$0xff] }
   0x8   :  { %171 = vmatpush3.bf16.msra.mxu0 %v170_v7 }
   0x9   :  { %172 = vmatprep.subr.bf16.mxu0 %v193_v0 }
   0xc   :  { %174 = vmatpush3.bf16.msra.mxu0 %v173_v10 }
   0xd   :  { %175 = vmatprep.subr.bf16.mxu0 %v193_v0 }
  0x10   :  { %177 = vmatpush3.bf16.msra.mxu0 %v176_v13 }
  0x11   :  { %178 = vmatprep.subr.bf16.mxu0 %v193_v0 }
  0x14   :  { %180 = vmatpush3.bf16.msra.mxu0 %v179_v16 }
  0x15   :  { %181 = vmatprep.subr.bf16.mxu0 %v193_v0 }
  0x18   :  { %183 = vmatpush3.bf16.msra.mxu0 %v182_v19 }
  0x19   :  { %184 = vmatprep.subr.bf16.mxu0 %v193_v0 }
  0x1c   :  { %186 = vmatpush3.bf16.msra.mxu0 %v185_v22 }
  0x1d   :  { %187 = vmatprep.subr.bf16.mxu0 %v193_v0 }
  0x20   :  { %189 = vmatpush3.bf16.msra.mxu0 %v188_v25 }
  0x23   :  { %164 = vmatmul.mubr.f32.vlgmr.msra.gmra.mrb[0].mxu0 %v14_v26 }
  0xf6   :  { %v104_v28 = vpop.f32.mrb[0].mxu0 }
  0xf7   :  { %v105_v29 = vadd.f32 %v113_v27, %v104_v28  ;;  %v165_v30 = vpop.f32.mrb[1].mxu0 }
  0xf9   :  { %108 = vst [vmem:[%s276_s3] sm:$0xf] %v105_v29 }

</bundles_post_ra>
